<compile_context>
chip_gen: v7x
topology: tpu7x:2x2x1
jax: 0.10.0
libtpu: 0.0.40
codegen_flags: <defaults>
</compile_context>

<pallas_src>
import jax
import jax.numpy as jnp
from jax.experimental import pallas as pl
from jax.experimental.pallas import tpu as pltpu

VMEM_SPEC = pl.BlockSpec(memory_space=pltpu.MemorySpace.VMEM)


# ---------------------------------------------------------------------------
# Kernel: the entire multiloss forward in one shot (one vreg of work).
#   packed_ref: (2, N) f32  -- row 0 = losses, row 1 = log_var
#   o_ref:      (1, 1) f32  -- combined scalar loss
# ---------------------------------------------------------------------------
def _multiloss_kernel(packed_ref, o_ref):
    ls = packed_ref[0:1, :]                               # (1, N) losses
    lv = packed_ref[1:2, :]                               # (1, N) log_var
    term = jnp.exp(-lv) * ls + lv                         # EUP exp + VPU mul/add
    o_ref[...] = jnp.sum(term, axis=1, keepdims=True)     # XLU lane reduce


def _multiloss_pallas(losses_arr, log_var_arr):
    """losses_arr, log_var_arr: (n,) f32.  Returns scalar f32."""
    packed = jnp.stack([losses_arr, log_var_arr], axis=0)  # (2, n), single DMA
    out = pl.pallas_call(
        _multiloss_kernel,
        out_shape=jax.ShapeDtypeStruct((1, 1), jnp.float32),
        in_specs=[VMEM_SPEC],
        out_specs=VMEM_SPEC,
    )(packed)
    return out[0, 0]


# ---------------------------------------------------------------------------
# custom_vjp: analytic gradients (backward is a few scalar elementwise ops;
# plain jnp is the right tool there -- no Pallas launch needed).
# ---------------------------------------------------------------------------
@jax.custom_vjp
def _multiloss_core(losses_arr, log_var_arr):
    return _multiloss_pallas(losses_arr, log_var_arr)


def _multiloss_fwd(losses_arr, log_var_arr):
    return _multiloss_pallas(losses_arr, log_var_arr), (losses_arr, log_var_arr)


def _multiloss_bwd(res, g):
    losses_arr, log_var_arr = res
    precision = jnp.exp(-log_var_arr)
    d_losses = g * precision
    d_log_var = g * (1.0 - precision * losses_arr)
    return d_losses, d_log_var


_multiloss_core.defvjp(_multiloss_fwd, _multiloss_bwd)


# ---------------------------------------------------------------------------
# Public wrapper (mirrors multiloss.forward(losses) with parameter log_var).
# ---------------------------------------------------------------------------
def multiloss_forward(losses, log_var):
    """losses: sequence of scalar losses or a 1-D array (objective_num,).
    log_var: (objective_num,) learnable parameter.
    Returns the scalar combined loss (shape (), f32)."""
    if isinstance(losses, (list, tuple)):
        losses = jnp.stack(
            [jnp.asarray(l, jnp.float32).reshape(()) for l in losses])
    losses = jnp.asarray(losses, jnp.float32).reshape(-1)
    log_var = jnp.asarray(log_var, jnp.float32).reshape(-1)
    return _multiloss_core(losses, log_var)


# ---------------------------------------------------------------------------
if __name__ == "__main__":
    key = jax.random.PRNGKey(0)
    k_loss, k_lv = jax.random.split(key)

    objective_num = 4
    # Per-objective scalar losses (e.g. outputs of 4 criterion heads).
    losses = jax.random.uniform(k_loss, (objective_num,), jnp.float32, 0.1, 2.0)
    # The module initializes log_var to zeros; also exercise a non-trivial
    # (trained) value so the exp path is actually tested.
    log_var_init = jnp.zeros((objective_num,), jnp.float32)
    log_var_trained = jax.random.normal(k_lv, (objective_num,), jnp.float32)

    fwd = jax.jit(multiloss_forward)

    def ref(ls, lv):
        return jnp.sum(jnp.exp(-lv) * ls + lv)

    for lv in (log_var_init, log_var_trained):
        out = fwd(losses, lv)
        jax.block_until_ready(out)
        expected = ref(losses, lv)
        assert out.shape == (), out.shape
        assert out.dtype == jnp.float32
        assert jnp.allclose(out, expected, rtol=1e-5, atol=1e-5), (out, expected)

    # Gradient check (module exists to learn log_var).
    g_kernel = jax.jit(jax.grad(multiloss_forward, argnums=(0, 1)))(
        losses, log_var_trained)
    g_ref = jax.grad(ref, argnums=(0, 1))(losses, log_var_trained)
    jax.block_until_ready(g_kernel)
    for gk, gr in zip(g_kernel, g_ref):
        assert jnp.allclose(gk, gr, rtol=1e-5, atol=1e-5), (gk, gr)

    print("KERNEL_OK")
</pallas_src>

<mosaic_0001>
module attributes {stable_mosaic.version = 11 : i64} {
  func.func @_multiloss_kernel(%arg0: memref<2x4xf32, #tpu.memory_space<vmem>>, %arg1: memref<1x1xf32, #tpu.memory_space<vmem>>) attributes {dimension_semantics = [], scalar_prefetch = 0 : i64, scratch_operands = 0 : i64, tpu.core_type = #tpu.core_type<tc>} {
    %c0 = arith.constant 0 : index
    %c0_0 = arith.constant 0 : index
    %0 = vector.load %arg0[%c0, %c0_0] : memref<2x4xf32, #tpu.memory_space<vmem>>, vector<1x4xf32>
    %c1 = arith.constant 1 : index
    %c0_1 = arith.constant 0 : index
    %1 = vector.load %arg0[%c1, %c0_1] : memref<2x4xf32, #tpu.memory_space<vmem>>, vector<1x4xf32>
    %cst = arith.constant 0.000000e+00 : f32
    %2 = vector.broadcast %cst : f32 to vector<1x4xf32>
    %3 = arith.subf %2, %1 : vector<1x4xf32>
    %4 = math.exp %3 : vector<1x4xf32>
    %5 = arith.mulf %4, %0 : vector<1x4xf32>
    %6 = arith.addf %5, %1 : vector<1x4xf32>
    %cst_2 = arith.constant dense<0.000000e+00> : vector<1xf32>
    %7 = vector.multi_reduction <add>, %6, %cst_2 [1] : vector<1x4xf32> to vector<1xf32>
    %8 = vector.shape_cast %7 : vector<1xf32> to vector<1x1xf32>
    %c0_3 = arith.constant 0 : index
    %c0_4 = arith.constant 0 : index
    %9 = vector.load %arg1[%c0_3, %c0_4] : memref<1x1xf32, #tpu.memory_space<vmem>>, vector<1x1xf32>
    tpu.vector_store %arg1[%c0_3, %c0_4], %8 {strides = array<i32>} : memref<1x1xf32, #tpu.memory_space<vmem>>, vector<1x1xf32>,
    return
  }
}

</mosaic_0001>

<bundles_post_ra>
// kernel: multiloss_forward.1
= control target key start
LH: loop header
LB: loop body
LE: loop exit
PB: predicated region body
PF: predicated region fallthrough
CT: control target
= control target key end

     0   :  { %s92_s0 = inlined_call_operand.vmem [shape: f32[2,4], index: 0, kind: input, shape index: {}]   ;;  %s93_s1 = inlined_call_operand.hbm [shape: f32[1,1], index: 1, kind: output, shape index: {}]  }
   0x1   :  { %v10_v0 = vld [vmem:[%s92_s0 + $0x1] sm:$0x1] }
   0x2   :  { %v11_v1 = vsub.f32 0.0, %v10_v0 }
   0x3   :  { %6 = vsyncpa [#allocation3], 0  ;;  %v9_v3 = vld [vmem:[%s92_s0] sm:$0x1]  ;;  %vm16_vm0 = vcmask 24576   ;;  %s63_s10 = smov [#allocation2]  }
   0x4   :  { %v12_v2 = vmul.f32 1.442695, %v11_v1  ;;  %s28_s11 = sshll.u32 %s63_s10, 4  ;;  %vm20_vm1 = vcmask 0   ;;  %s29_s11 = int_to_ptr.vmem [resolvable:$true] %s28_s11 }
   0x5   :  { %s39_s12 = scalar_lea.vmem %s29_s11, 16  ;;  %s43_s13 = scalar_lea.vmem %s29_s11, 32 }
   0x6   :  { %37 = vpow2.f32 %v12_v2  ;;  %p40_p0 = scmp.ne.s32.totalorder %s29_s11, %s39_s12  ;;  %p44_p1 = scmp.lt.s32.totalorder %s29_s11, %s29_s11 }
   0x7   :  { %p45_p2 = scmp.lt.s32.totalorder %s43_s13, %s39_s12 }
   0x9   :  { %p46_p3 = por %p45_p2, %p44_p1 }
   0xb   :  { %p47_p4 = pnand %p46_p3, %p40_p0 }
  0x10   :  { %v38_v4 = vpop.eup %37 }
  0x11   :  { %v14_v5 = vmul.f32 %v38_v4, %v9_v3 }
  0x13   :  { %v15_v6 = vadd.f32 %v14_v5, %v10_v0 }
  0x15   :  { %v17_v7 = vsel %vm16_vm0, %v15_v6, 0.0 }
  0x16   :  { %18 = vadd.xlane.f32.xlu0 %v17_v7 }
  0xa3   :  { %v19_v8 = vpop.xlane.xlu0 %18 }
  0xa4   :  { %21 = vst.msk [vmem:[#allocation2] sm:$0x1] %vm20_vm1, %v19_v8 }
  0xa5   :  { %50 = shalt.err (!%p47_p4)
}
  0xa6   :  { %s51_s15 = scalar_lea.hbm %s93_s1, 16 }
  0xa7   :  { %p52_p5 = scmp.ne.s32.totalorder %s93_s1, %s51_s15  ;;  %p55_p6 = scmp.lt.u32.totalorder %s51_s15, %s93_s1 }
  0xa9   :  { %p57_p7 = pnand %p55_p6, %p52_p5 }
  0xab   :  { %60 = shalt.err (!%p57_p7)
}
  0xac   :  { %31 = dma.vmem_to_hbm [thread:$0]  %s29_s11, 16, %s93_s1, [#allocation3]  }
  0xad   :  { %61 = dma.done.wait [#allocation3], 16  }
  0xae   :  { %62 = vsyncadd [#allocation3], 4294967280 }
  0xaf   :  { %35 = vsyncpa [#allocation3], 1 }

</bundles_post_ra>
